<compile_context>
chip_gen: v5e
topology: v5e:2x2
jax: 0.10.0
libtpu: 0.0.40
codegen_flags: <defaults>
</compile_context>

<pallas_src>
import jax
import jax.numpy as jnp
from jax import lax
from jax.experimental import pallas as pl
from jax.experimental.pallas import tpu as pltpu

_LN_EPS = 1e-5
_INV_SQRT2 = 0.7071067811865476


def _round_up(n: int, m: int) -> int:
    return ((n + m - 1) // m) * m


def _projection_head_kernel(x_ref, w1_ref, w2_ref, params_ref, o_ref):
    # params slab rows: 0 = b1, 1 = b2, 2 = gamma, 3 = beta   (static slices)
    b1 = params_ref[0:1, :]
    b2 = params_ref[1:2, :]
    gamma = params_ref[2:3, :]
    beta = params_ref[3:4, :]

    x = x_ref[...]

    # projection = Linear(emb_dim -> projection_dim), f32 accumulation on MXU
    projected = jnp.dot(x, w1_ref[...], preferred_element_type=jnp.float32) + b1

    # exact GELU: 0.5 * t * (1 + erf(t / sqrt(2)))  (PyTorch nn.GELU default)
    h = 0.5 * projected * (1.0 + lax.erf(projected * _INV_SQRT2))

    # fc = Linear(projection_dim -> projection_dim)
    y = jnp.dot(h.astype(w2_ref.dtype), w2_ref[...],
                preferred_element_type=jnp.float32) + b2

    # dropout: identity at inference

    # residual + scale by 1/sqrt(2)
    z = (y + projected) * _INV_SQRT2

    # LayerNorm over last dim (eps=1e-5, elementwise affine)
    mean = jnp.mean(z, axis=-1, keepdims=True)
    cent = z - mean
    var = jnp.mean(cent * cent, axis=-1, keepdims=True)
    out = cent * lax.rsqrt(var + _LN_EPS) * gamma + beta

    o_ref[...] = out.astype(o_ref.dtype)


def projection_head(x, w1, b1, w2, b2, gamma, beta, *, block_b: int = 512):
    """Fused ProjectionHead forward.

    x:      (B, E)
    w1:     (E, P)   pre-transposed nn.Linear weight (in, out)
    b1:     (P,) or (1, P)
    w2:     (P, P)   pre-transposed nn.Linear weight (in, out)
    b2:     (P,) or (1, P)
    gamma:  (P,) or (1, P)   LayerNorm weight
    beta:   (P,) or (1, P)   LayerNorm bias
    returns (B, P)
    """
    B, E = x.shape
    P = w1.shape[1]
    assert w1.shape == (E, P) and w2.shape == (P, P)

    # Pack the four per-feature vectors into a single (4, P) slab -> one DMA.
    params = jnp.stack(
        [b1.reshape(P), b2.reshape(P), gamma.reshape(P), beta.reshape(P)],
        axis=0,
    ).astype(jnp.float32)

    # Batch tile: as large as sensible (amortize per-step overhead, feed the MXU
    # >=128/256 rows), clamped to the (sublane-rounded) batch size.
    TB = min(block_b, _round_up(B, 8))
    padded_B = _round_up(B, TB)
    if padded_B != B:
        x = jnp.pad(x, ((0, padded_B - B), (0, 0)))

    grid = (padded_B // TB,)

    out = pl.pallas_call(
        _projection_head_kernel,
        out_shape=jax.ShapeDtypeStruct((padded_B, P), x.dtype),
        grid=grid,
        in_specs=[
            pl.BlockSpec((TB, E), lambda i: (i, 0)),   # x tile, pipelined over batch
            pl.BlockSpec((E, P), lambda i: (0, 0)),    # W1, VMEM-resident
            pl.BlockSpec((P, P), lambda i: (0, 0)),    # W2, VMEM-resident
            pl.BlockSpec((4, P), lambda i: (0, 0)),    # [b1; b2; gamma; beta]
        ],
        out_specs=pl.BlockSpec((TB, P), lambda i: (i, 0)),
        compiler_params=pltpu.CompilerParams(
            dimension_semantics=("parallel",)),        # megacore on v7x
    )(x, w1, w2, params)

    return out[:B] if padded_B != B else out


def projection_head_ref(x, w1, b1, w2, b2, gamma, beta):
    """Pure-JAX reference with identical semantics."""
    b1 = b1.reshape(1, -1)
    b2 = b2.reshape(1, -1)
    gamma = gamma.reshape(1, -1)
    beta = beta.reshape(1, -1)
    projected = x @ w1 + b1
    h = 0.5 * projected * (1.0 + lax.erf(projected * _INV_SQRT2))
    y = h @ w2 + b2
    z = (y + projected) * _INV_SQRT2
    mean = jnp.mean(z, axis=-1, keepdims=True)
    var = jnp.mean((z - mean) ** 2, axis=-1, keepdims=True)
    return (z - mean) / jnp.sqrt(var + _LN_EPS) * gamma + beta


if __name__ == "__main__":
    batch, emb_dim, projection_dim = 8, 32, 128

    key = jax.random.PRNGKey(0)
    kx, kw1, kb1, kw2, kb2 = jax.random.split(key, 5)

    x = jax.random.normal(kx, (batch, emb_dim), dtype=jnp.float32)

    # deterministic parameter init (uniform ~ nn.Linear default scale)
    lim1 = 1.0 / jnp.sqrt(emb_dim)
    lim2 = 1.0 / jnp.sqrt(projection_dim)
    w1 = jax.random.uniform(kw1, (emb_dim, projection_dim), jnp.float32, -lim1, lim1)
    b1 = jax.random.uniform(kb1, (projection_dim,), jnp.float32, -lim1, lim1)
    w2 = jax.random.uniform(kw2, (projection_dim, projection_dim), jnp.float32, -lim2, lim2)
    b2 = jax.random.uniform(kb2, (projection_dim,), jnp.float32, -lim2, lim2)
    gamma = jnp.ones((projection_dim,), jnp.float32)    # nn.LayerNorm weight init
    beta = jnp.zeros((projection_dim,), jnp.float32)    # nn.LayerNorm bias init

    out = projection_head(x, w1, b1, w2, b2, gamma, beta)
    out = jax.block_until_ready(out)

    ref = projection_head_ref(x, w1, b1, w2, b2, gamma, beta)
    assert out.shape == (batch, projection_dim)
    assert jnp.allclose(out, ref, atol=1e-4, rtol=1e-4)

    # Also exercise a batch that actually tiles (multiple grid steps + padding path).
    big_B = 1100
    xb = jax.random.normal(kx, (big_B, emb_dim), dtype=jnp.float32)
    out_b = jax.block_until_ready(
        projection_head(xb, w1, b1, w2, b2, gamma, beta, block_b=512))
    ref_b = projection_head_ref(xb, w1, b1, w2, b2, gamma, beta)
    assert out_b.shape == (big_B, projection_dim)
    assert jnp.allclose(out_b, ref_b, atol=1e-4, rtol=1e-4)

    print("KERNEL_OK")
</pallas_src>

<mosaic_0001>
module attributes {stable_mosaic.version = 11 : i64} {
  func.func @_projection_head_kernel(%arg0: i32, %arg1: memref<8x32xf32, #tpu.memory_space<vmem>>, %arg2: memref<32x128xf32, #tpu.memory_space<vmem>>, %arg3: memref<128x128xf32, #tpu.memory_space<vmem>>, %arg4: memref<4x128xf32, #tpu.memory_space<vmem>>, %arg5: memref<8x128xf32, #tpu.memory_space<vmem>>) attributes {dimension_semantics = [#tpu.dimension_semantics<parallel>], iteration_bounds = array<i64: 1>, scalar_prefetch = 0 : i64, scratch_operands = 0 : i64, tpu.core_type = #tpu.core_type<tc>, window_params = [{transform_indices = @transform_0, window_bounds = array<i64: 8, 32>}, {pipeline_mode = #tpu.pipeline_mode<synchronous>, transform_indices = @transform_1, window_bounds = array<i64: 32, 128>}, {pipeline_mode = #tpu.pipeline_mode<synchronous>, transform_indices = @transform_2, window_bounds = array<i64: 128, 128>}, {pipeline_mode = #tpu.pipeline_mode<synchronous>, transform_indices = @transform_3, window_bounds = array<i64: 4, 128>}, {transform_indices = @transform_4, window_bounds = array<i64: 8, 128>}]} {
    %c0 = arith.constant 0 : index
    %c0_0 = arith.constant 0 : index
    %0 = vector.load %arg4[%c0, %c0_0] : memref<4x128xf32, #tpu.memory_space<vmem>>, vector<1x128xf32>
    %c1 = arith.constant 1 : index
    %c0_1 = arith.constant 0 : index
    %1 = vector.load %arg4[%c1, %c0_1] : memref<4x128xf32, #tpu.memory_space<vmem>>, vector<1x128xf32>
    %c2 = arith.constant 2 : index
    %c0_2 = arith.constant 0 : index
    %2 = vector.load %arg4[%c2, %c0_2] : memref<4x128xf32, #tpu.memory_space<vmem>>, vector<1x128xf32>
    %c3 = arith.constant 3 : index
    %c0_3 = arith.constant 0 : index
    %3 = vector.load %arg4[%c3, %c0_3] : memref<4x128xf32, #tpu.memory_space<vmem>>, vector<1x128xf32>
    %c0_4 = arith.constant 0 : index
    %c0_5 = arith.constant 0 : index
    %4 = vector.load %arg1[%c0_4, %c0_5] : memref<8x32xf32, #tpu.memory_space<vmem>>, vector<8x32xf32>
    %c0_6 = arith.constant 0 : index
    %c0_7 = arith.constant 0 : index
    %5 = vector.load %arg2[%c0_6, %c0_7] : memref<32x128xf32, #tpu.memory_space<vmem>>, vector<32x128xf32>
    %cst = arith.constant dense<0.000000e+00> : vector<8x128xf32>
    %6 = tpu.matmul %4, %5, %cst {dimension_numbers = #tpu.dot_dimension_numbers<[1], [0], [0], [1], [0, 0, 1, 1], [], []>} : vector<8x32xf32>, vector<32x128xf32>, vector<8x128xf32> -> vector<8x128xf32>
    %7 = vector.broadcast %0 : vector<1x128xf32> to vector<8x128xf32>
    %8 = arith.addf %6, %7 : vector<8x128xf32>
    %cst_8 = arith.constant 5.000000e-01 : f32
    %9 = vector.broadcast %cst_8 : f32 to vector<8x128xf32>
    %10 = arith.mulf %9, %8 : vector<8x128xf32>
    %cst_9 = arith.constant 0.707106769 : f32
    %11 = vector.broadcast %cst_9 : f32 to vector<8x128xf32>
    %12 = arith.mulf %8, %11 : vector<8x128xf32>
    %13 = math.erf %12 : vector<8x128xf32>
    %cst_10 = arith.constant 1.000000e+00 : f32
    %14 = vector.broadcast %cst_10 : f32 to vector<8x128xf32>
    %15 = arith.addf %14, %13 : vector<8x128xf32>
    %16 = arith.mulf %10, %15 : vector<8x128xf32>
    %c0_11 = arith.constant 0 : index
    %c0_12 = arith.constant 0 : index
    %17 = vector.load %arg3[%c0_11, %c0_12] : memref<128x128xf32, #tpu.memory_space<vmem>>, vector<128x128xf32>
    %cst_13 = arith.constant dense<0.000000e+00> : vector<8x128xf32>
    %18 = tpu.matmul %16, %17, %cst_13 {dimension_numbers = #tpu.dot_dimension_numbers<[1], [0], [0], [1], [0, 0, 1, 1], [], []>} : vector<8x128xf32>, vector<128x128xf32>, vector<8x128xf32> -> vector<8x128xf32>
    %19 = vector.broadcast %1 : vector<1x128xf32> to vector<8x128xf32>
    %20 = arith.addf %18, %19 : vector<8x128xf32>
    %21 = arith.addf %20, %8 : vector<8x128xf32>
    %cst_14 = arith.constant 0.707106769 : f32
    %22 = vector.broadcast %cst_14 : f32 to vector<8x128xf32>
    %23 = arith.mulf %21, %22 : vector<8x128xf32>
    %cst_15 = arith.constant dense<0.000000e+00> : vector<8xf32>
    %24 = vector.multi_reduction <add>, %23, %cst_15 [1] : vector<8x128xf32> to vector<8xf32>
    %25 = vector.shape_cast %24 : vector<8xf32> to vector<8x1xf32>
    %cst_16 = arith.constant 1.280000e+02 : f32
    %26 = vector.broadcast %cst_16 : f32 to vector<8x1xf32>
    %27 = arith.divf %25, %26 : vector<8x1xf32>
    %28 = vector.broadcast %27 : vector<8x1xf32> to vector<8x128xf32>
    %29 = arith.subf %23, %28 : vector<8x128xf32>
    %30 = arith.mulf %29, %29 : vector<8x128xf32>
    %cst_17 = arith.constant dense<0.000000e+00> : vector<8xf32>
    %31 = vector.multi_reduction <add>, %30, %cst_17 [1] : vector<8x128xf32> to vector<8xf32>
    %32 = vector.shape_cast %31 : vector<8xf32> to vector<8x1xf32>
    %cst_18 = arith.constant 1.280000e+02 : f32
    %33 = vector.broadcast %cst_18 : f32 to vector<8x1xf32>
    %34 = arith.divf %32, %33 : vector<8x1xf32>
    %cst_19 = arith.constant 9.99999974E-6 : f32
    %35 = vector.broadcast %cst_19 : f32 to vector<8x1xf32>
    %36 = arith.addf %34, %35 : vector<8x1xf32>
    %37 = math.rsqrt %36 : vector<8x1xf32>
    %38 = vector.broadcast %37 : vector<8x1xf32> to vector<8x128xf32>
    %39 = arith.mulf %29, %38 : vector<8x128xf32>
    %40 = vector.broadcast %2 : vector<1x128xf32> to vector<8x128xf32>
    %41 = arith.mulf %39, %40 : vector<8x128xf32>
    %42 = vector.broadcast %3 : vector<1x128xf32> to vector<8x128xf32>
    %43 = arith.addf %41, %42 : vector<8x128xf32>
    %c0_20 = arith.constant 0 : index
    %c0_21 = arith.constant 0 : index
    %44 = vector.load %arg5[%c0_20, %c0_21] : memref<8x128xf32, #tpu.memory_space<vmem>>, vector<8x128xf32>
    tpu.vector_store %arg5[%c0_20, %c0_21], %43 {strides = array<i32>} : memref<8x128xf32, #tpu.memory_space<vmem>>, vector<8x128xf32>,
    return
  }
  func.func @transform_0(%arg0: i32) -> (i32, i32) {
    %c0_i32 = arith.constant 0 : i32
    %c0_i32_0 = arith.constant 0 : i32
    return %arg0, %c0_i32 : i32, i32
  }
  func.func @transform_1(%arg0: i32) -> (i32, i32) {
    %c0_i32 = arith.constant 0 : i32
    %c0_i32_0 = arith.constant 0 : i32
    %c0_i32_1 = arith.constant 0 : i32
    return %c0_i32, %c0_i32_0 : i32, i32
  }
  func.func @transform_2(%arg0: i32) -> (i32, i32) {
    %c0_i32 = arith.constant 0 : i32
    %c0_i32_0 = arith.constant 0 : i32
    %c0_i32_1 = arith.constant 0 : i32
    return %c0_i32, %c0_i32_0 : i32, i32
  }
  func.func @transform_3(%arg0: i32) -> (i32, i32) {
    %c0_i32 = arith.constant 0 : i32
    %c0_i32_0 = arith.constant 0 : i32
    %c0_i32_1 = arith.constant 0 : i32
    return %c0_i32, %c0_i32_0 : i32, i32
  }
  func.func @transform_4(%arg0: i32) -> (i32, i32) {
    %c0_i32 = arith.constant 0 : i32
    %c0_i32_0 = arith.constant 0 : i32
    return %arg0, %c0_i32 : i32, i32
  }
}

</mosaic_0001>

<bundles_post_ra>
// kernel: tpu_custom_call.1
= control target key start
LH: loop header
LB: loop body
LE: loop exit
PB: predicated region body
PF: predicated region fallthrough
CT: control target
= control target key end

     0   :  { %9 = vsyncpa [#allocation3], 0  ;;  %s441_s0 = inlined_call_operand.hbm [shape: f32[8,32], index: 0, kind: input, shape index: {}]   ;;  %s442_s1 = inlined_call_operand.hbm [shape: f32[32,128], index: 1, kind: input, shape index: {}]   ;;  %s443_s2 = inlined_call_operand.hbm [shape: f32[128,128], index: 2, kind: input, shape index: {}]   ;;  %s444_s3 = inlined_call_operand.hbm [shape: f32[4,128], index: 3, kind: input, shape index: {}]   ;;  %s445_s4 = inlined_call_operand.hbm [shape: f32[8,128], index: 4, kind: output, shape index: {}]  }
   0x1   :  { %10 = vsyncpa [#allocation6], 0 }
   0x2   :  { %11 = vsyncpa [#allocation9], 0  ;;  %s28_s17 = sshll.u32 %s442_s1, 4  ;;  %s29_s17 = int_to_ptr.hbm [resolvable:$true] %s28_s17 }
   0x3   :  { %12 = vsyncpa [#allocation4], 0  ;;  %s393_s18 = smov [#allocation5]   ;;  %s18_s22 = sshll.u32 %s441_s0, 4  ;;  %s19_s22 = int_to_ptr.hbm [resolvable:$true] %s18_s22 }
   0x4   :  { %s30_s19 = sshll.u32 %s393_s18, 4  ;;  %s394_s23 = smov 128   ;;  %s31_s19 = int_to_ptr.vmem [resolvable:$true] %s30_s19 }
   0x5   :  { %s395_s24 = smov 8   ;;  %s396_s25 = smov [#allocation2]  }
   0x6   :  { %36 = dma.hbm_to_vmem [thread:$0]  %s29_s17, 512, %s31_s19, [#allocation6], %s394_s23, %s394_s23, %s395_s24  }
   0x7   :  { %s20_s26 = sshll.u32 %s396_s25, 4  ;;  %s41_s29 = sshll.u32 %s443_s2, 4  ;;  %s21_s26 = int_to_ptr.vmem [resolvable:$true] %s20_s26  ;;  %s42_s29 = int_to_ptr.hbm [resolvable:$true] %s41_s29 }
   0x8   :  { %23 = dma.hbm_to_vmem [thread:$0]  %s19_s22, 128, %s21_s26, [#allocation3]  }
   0x9   :  { %s55_s5 = sshll.u32 %s444_s3, 4  ;;  %s397_s6 = smov [#allocation7]   ;;  %s56_s5 = int_to_ptr.hbm [resolvable:$true] %s55_s5 }
   0xa   :  { %s43_s7 = sshll.u32 %s397_s6, 4  ;;  %s398_s0 = smov [#allocation8]   ;;  %s44_s7 = int_to_ptr.vmem [resolvable:$true] %s43_s7 }
   0xb   :  { %49 = dma.hbm_to_vmem [thread:$0]  %s42_s29, 2048, %s44_s7, [#allocation6], %s394_s23, %s394_s23, %s395_s24  }
   0xc   :  { %s57_s8 = sshll.u32 %s398_s0, 4  ;;  %s58_s8 = int_to_ptr.vmem [resolvable:$true] %s57_s8 }
   0xd   :  { %60 = dma.hbm_to_vmem [thread:$0]  %s56_s5, 64, %s58_s8, [#allocation9]  }
   0xe   :  { %385 = dma.done.wait [#allocation3], 128  }
   0xf   :  { %386 = vsyncadd [#allocation3], 4294967168 }
  0x10   :  { %387 = dma.done.wait [#allocation6], 2560  }
  0x11   :  { %388 = vsyncadd [#allocation6], 4294964736 }
  0x12   :  { %389 = dma.done.wait [#allocation9], 64  }
  0x13   :  { %390 = vsyncadd [#allocation9], 4294967232  ;;  %v85_v0 = vld [vmem:[#allocation5 + $0x18] sm:$0xff]  ;;  %v84_v1 = vld [vmem:[#allocation5 + $0x10] sm:$0xff]  ;;  %vm87_vm0 = vcmask 261120   ;;  %s400_s2 = smov [#allocation10]  }
  0x14   :  { %103 = vmatpush.msra.mxu0 %v85_v0  ;;  %v83_v2 = vld [vmem:[#allocation5 + $0x8] sm:$0xff]  ;;  %v82_v3 = vld [vmem:[#allocation5] sm:$0xff]  ;;  %v81_v4 = vld [vmem:[#allocation2] sm:$0xff]  ;;  %s231_s3 = sshll.u32 %s400_s2, 4  ;;  %s233_s11 = sshll.u32 %s445_s4, 4  ;;  %s232_s3 = int_to_ptr.vmem [resolvable:$true] %s231_s3  ;;  %s234_s11 = int_to_ptr.hbm [resolvable:$true] %s233_s11 }
  0x15   :  { %v170_v5 = vld [vmem:[#allocation7 + $0x78] sm:$0xff]  ;;  %v169_v6 = vld [vmem:[#allocation7 + $0x70] sm:$0xff]  ;;  %v168_v7 = vld [vmem:[#allocation7 + $0x68] sm:$0xff] }
  0x16   :  { %104 = vmatpush.msra.mxu0 %v84_v1  ;;  %172 = vmatpush.msra.mxu1 %v170_v5  ;;  %v167_v8 = vld [vmem:[#allocation7 + $0x60] sm:$0xff]  ;;  %v166_v9 = vld [vmem:[#allocation7 + $0x58] sm:$0xff]  ;;  %v165_v10 = vld [vmem:[#allocation7 + $0x50] sm:$0xff] }
  0x17   :  { %v164_v11 = vld [vmem:[#allocation7 + $0x48] sm:$0xff]  ;;  %v163_v12 = vld [vmem:[#allocation7 + $0x40] sm:$0xff]  ;;  %v162_v13 = vld [vmem:[#allocation7 + $0x38] sm:$0xff] }
  0x18   :  { %105 = vmatpush.msra.mxu0 %v83_v2  ;;  %173 = vmatpush.msra.mxu1 %v169_v6  ;;  %v161_v14 = vld [vmem:[#allocation7 + $0x30] sm:$0xff]  ;;  %v160_v15 = vld [vmem:[#allocation7 + $0x28] sm:$0xff]  ;;  %v159_v16 = vld [vmem:[#allocation7 + $0x20] sm:$0xff] }
  0x19   :  { %v255_v17 = vld [vmem:[#allocation8] ss:$0 sm:$0xff]  ;;  %v158_v18 = vld [vmem:[#allocation7 + $0x18] sm:$0xff]  ;;  %v157_v19 = vld [vmem:[#allocation7 + $0x10] sm:$0xff] }
  0x1a   :  { %106 = vmatpush.msra.mxu0 %v82_v3  ;;  %174 = vmatpush.msra.mxu1 %v168_v7  ;;  %v156_v22 = vld [vmem:[#allocation7 + $0x8] sm:$0xff]  ;;  %v155_v24 = vld [vmem:[#allocation7] sm:$0xff] }
  0x1b   :  { %245 = vmatmul.msk.f32.vlgmr.msra.gmra.mxu0 %vm87_vm0, %v81_v4  ;;  %v256_v63 = vld [vmem:[#allocation8 + $0x1] ss:$0 sm:$0xff]  ;;  %v399_v4 = vmov 128.0  }
  0x1c   :  { %175 = vmatpush.msra.mxu1 %v167_v8 }
  0x1e   :  { %176 = vmatpush.msra.mxu1 %v166_v9 }
  0x20   :  { %177 = vmatpush.msra.mxu1 %v165_v10 }
  0x22   :  { %178 = vmatpush.msra.mxu1 %v164_v11 }
  0x24   :  { %179 = vmatpush.msra.mxu1 %v163_v12 }
  0x26   :  { %180 = vmatpush.msra.mxu1 %v162_v13 }
  0x28   :  { %181 = vmatpush.msra.mxu1 %v161_v14 }
  0x2a   :  { %182 = vmatpush.msra.mxu1 %v160_v15 }
  0x2c   :  { %183 = vmatpush.msra.mxu1 %v159_v16 }
  0x2e   :  { %184 = vmatpush.msra.mxu1 %v158_v18 }
  0x30   :  { %185 = vmatpush.msra.mxu1 %v157_v19 }
  0x32   :  { %186 = vmatpush.msra.mxu1 %v156_v22 }
  0x34   :  { %187 = vmatpush.msra.mxu1 %v155_v24  ;;  %v257_v24 = vld [vmem:[#allocation8 + $0x2] ss:$0 sm:$0xff] }
  0x98   :  { %v108_v20 = vpop.f32.mrf.mxu0 }
  0x99   :  { %v109_v21 = vadd.f32 %v255_v17, %v108_v20 }
  0x9b   :  { %v112_v23 = vmul.f32 0.70710677, %v109_v21  ;;  %v111_v60 = vmul.f32 0.5, %v109_v21 }
  0x9d   :  { %v113_v25 = vmul.f32 %v112_v23, %v112_v23 }
  0x9f   :  { %v114_v26 = vmin.f32 %v113_v25, 16.0 }
  0xa1   :  { %v115_v27 = vmul.f32 2.1237322e-06, %v114_v26  ;;  %v126_v28 = vmul.f32 3.8918573e-05, %v114_v26 }
  0xa3   :  { %v116_v29 = vadd.f32 0.00028619796, %v115_v27  ;;  %v127_v30 = vadd.f32 0.001143296, %v126_v28  ;;  %v258_v27 = vld [vmem:[#allocation8 + $0x3] ss:$0 sm:$0xff] }
  0xa5   :  { %v117_v31 = vmul.f32 %v116_v29, %v114_v26  ;;  %v128_v32 = vmul.f32 %v127_v30, %v114_v26 }
  0xa7   :  { %v129_v33 = vadd.f32 0.014752088, %v128_v32  ;;  %v118_v34 = vadd.f32 0.0036580483, %v117_v31 }
  0xa9   :  { %v130_v35 = vmul.f32 %v129_v33, %v114_v26  ;;  %v119_v37 = vmul.f32 %v118_v34, %v114_v26 }
  0xab   :  { %v131_v36 = vadd.f32 0.112945676, %v130_v35  ;;  %v120_v40 = vadd.f32 0.05243302, %v119_v37 }
  0xad   :  { %v132_v38 = vmul.f32 %v131_v36, %v114_v26  ;;  %v121_v43 = vmul.f32 %v120_v40, %v114_v26 }
  0xaf   :  { %v133_v39 = vadd.f32 0.4994258, %v132_v38  ;;  %v122_v44 = vadd.f32 0.18741608, %v121_v43 }
  0xb1   :  { %v134_v41 = vmul.f32 %v133_v39, %v114_v26  ;;  %v123_v46 = vmul.f32 %v122_v44, %v114_v26 }
  0xb3   :  { %v135_v42 = vadd.f32 1.0, %v134_v41  ;;  %v124_v50 = vadd.f32 1.1283791, %v123_v46 }
  0xb5   :  { %259 = vrcp.f32 %v135_v42  ;;  %v147_v49 = vand.u32 2147483648, %v135_v42  ;;  %v145_v52 = vand.u32 2147483647, %v135_v42  ;;  %vm141_vm2 = vweird.f32 %v135_v42 }
  0xb6   :  { %v125_v55 = vmul.f32 %v124_v50, %v112_v23  ;;  %261 = vrcp.f32 %v399_v4 }
  0xb7   :  { %v148_v54 = vor.u32 1.1754944e-38, %v147_v49  ;;  %vm146_vm4 = vcmp.eq.f32.partialorder %v145_v52, 8.507059e+37 }
  0xbb   :  { %v260_v45 = vpop.eup %259 }
  0xbc   :  { %v137_v47 = vmul.f32 %v260_v45, %v135_v42  ;;  %vm142_vm1 = vweird.f32 %v260_v45  ;;  %v262_v5 = vpop.eup %261 }
  0xbd   :  { %vm143_vm3 = vmor %vm141_vm2, %vm142_vm1  ;;  %v197_v6 = vmul.f32 128.0, %v262_v5  ;;  %vm201_vm5 = vweird.f32 %v262_v5 }
  0xbe   :  { %v138_v48 = vsub.f32 1.0, %v137_v47 }
  0xbf   :  { %v198_v7 = vsub.f32 1.0, %v197_v6 }
  0xc0   :  { %v139_v51 = vmul.f32 %v260_v45, %v138_v48 }
  0xc1   :  { %v199_v8 = vmul.f32 %v262_v5, %v198_v7 }
  0xc2   :  { %v140_v53 = vadd.f32 %v260_v45, %v139_v51 }
  0xc3   :  { %v200_v9 = vadd.f32 %v262_v5, %v199_v8 }
  0xc4   :  { %v144_v56 = vsel %vm143_vm3, %v260_v45, %v140_v53 }
  0xc5   :  { %v149_v57 = vsel %vm146_vm4, %v148_v54, %v144_v56  ;;  %v202_v10 = vsel %vm201_vm5, %v262_v5, %v200_v9 }
  0xc6   :  { %v150_v58 = vmul.f32 %v149_v57, %v125_v55 }
  0xc8   :  { %v246_v59 = vclamps-f32 %v150_v58, 1.0 }
  0xca   :  { %v153_v61 = vadd.f32 1.0, %v246_v59 }
  0xcc   :  { %v154_v62 = vmul.f32 %v153_v61, %v111_v60 }
  0xce   :  { %188 = vmatmul.f32.vlgmr.msra.gmra.mxu1 %v154_v62 }
 0x14b   :  { %v189_v0 = vpop.f32.mrf.mxu1 }
 0x14c   :  { %v190_v1 = vadd.f32 %v256_v63, %v189_v0 }
 0x14e   :  { %v192_v2 = vadd.f32 %v190_v1, %v109_v21 }
 0x150   :  { %v193_v3 = vmul.f32 0.70710677, %v192_v2 }
 0x152   :  { %194 = vadd.xlane.f32.xlu0 %v193_v3 }
 0x1c5   :  { %v195_v11 = vpop.xlane.xlu0 %194 }
 0x1c6   :  { %v203_v12 = vmul.f32 %v202_v10, %v195_v11 }
 0x1c8   :  { %v204_v13 = vsub.f32 %v193_v3, %v203_v12 }
 0x1ca   :  { %v205_v14 = vmul.f32 %v204_v13, %v204_v13 }
 0x1cc   :  { %206 = vadd.xlane.f32.xlu0 %v205_v14 }
 0x23f   :  { %v207_v15 = vpop.xlane.xlu0 %206 }
 0x240   :  { %v208_v16 = vmul.f32 %v207_v15, %v202_v10 }
 0x242   :  { %v209_v17 = vadd.f32 1e-05, %v208_v16 }
 0x244   :  { %263 = vrsqrt.f32 %v209_v17  ;;  %vm216_vm7 = vweird.f32 %v209_v17 }
 0x24a   :  { %v264_v18 = vpop.eup %263 }
 0x24b   :  { %v211_v19 = vmul.f32 %v264_v18, %v209_v17  ;;  %vm217_vm6 = vweird.f32 %v264_v18 }
 0x24c   :  { %vm218_vm8 = vmor %vm216_vm7, %vm217_vm6 }
 0x24d   :  { %v212_v20 = vmul.f32 %v264_v18, %v211_v19 }
 0x24f   :  { %v213_v21 = vmul.f32 0.5, %v212_v20 }
 0x251   :  { %v214_v22 = vsub.f32 1.5, %v213_v21 }
 0x253   :  { %v215_v23 = vmul.f32 %v264_v18, %v214_v22 }
 0x255   :  { %v219_v25 = vsel %vm218_vm8, %v264_v18, %v215_v23 }
 0x256   :  { %v220_v26 = vmul.f32 %v219_v25, %v204_v13 }
 0x258   :  { %v222_v28 = vmul.f32 %v257_v24, %v220_v26 }
 0x25a   :  { %v224_v29 = vadd.f32 %v258_v27, %v222_v28 }
 0x25c   :  { %225 = vst [vmem:[#allocation10] sm:$0xff] %v224_v29 }
 0x25d   :  { %236 = dma.vmem_to_hbm [thread:$0]  %s232_s3, 128, %s234_s11, [#allocation4]  }
 0x25e   :  { %391 = dma.done.wait [#allocation4], 128  }
 0x25f   :  { %392 = vsyncadd [#allocation4], 4294967168 }
 0x260   :  { %241 = vsyncpa [#allocation3], 1 }
 0x261   :  { %242 = vsyncpa [#allocation6], 1 }
 0x262   :  { %243 = vsyncpa [#allocation9], 1 }
 0x263   :  { %244 = vsyncpa [#allocation4], 1 }

</bundles_post_ra>
